<compile_context>
chip_gen: v7x
topology: tpu7x:2x2x1
jax: 0.10.0
libtpu: 0.0.40
codegen_flags: <defaults>
</compile_context>

<pallas_src>
import jax
import jax.numpy as jnp
from jax.experimental import pallas as pl
from jax.experimental.pallas import tpu as pltpu


def _round_up(x, m):
    return ((x + m - 1) // m) * m


def _q_mlp_fused_kernel(x_ref, fw_ref, fb_ref, hw_ref, hb_ref, o_ref):
    # x_ref : (Bp, Dp)  bf16     fw_ref: (Dp, Hp) bf16    fb_ref: (1, Hp) f32
    # hw_ref: (Hp, Np)  bf16     hb_ref: (1, Np)  f32     o_ref : (Bp, Np) f32
    h = jnp.dot(x_ref[...], fw_ref[...], preferred_element_type=jnp.float32)
    h = jnp.maximum(h + fb_ref[...], 0.0)
    y = jnp.dot(h.astype(hw_ref.dtype), hw_ref[...],
                preferred_element_type=jnp.float32)
    o_ref[...] = (y + hb_ref[...]).astype(o_ref.dtype)


def _fused_forward_call(x_p, fw, fb, hw, hb):
    Bp, Dp = x_p.shape
    Hp = fw.shape[1]
    Np = hw.shape[1]
    return pl.pallas_call(
        _q_mlp_fused_kernel,
        out_shape=jax.ShapeDtypeStruct((Bp, Np), jnp.float32),
        grid=(1,),
        in_specs=[
            pl.BlockSpec((Bp, Dp), lambda i: (0, 0)),
            pl.BlockSpec((Dp, Hp), lambda i: (0, 0)),
            pl.BlockSpec((1, Hp), lambda i: (0, 0)),
            pl.BlockSpec((Hp, Np), lambda i: (0, 0)),
            pl.BlockSpec((1, Np), lambda i: (0, 0)),
        ],
        out_specs=pl.BlockSpec((Bp, Np), lambda i: (0, 0)),
        compiler_params=pltpu.CompilerParams(
            dimension_semantics=("arbitrary",)),
    )(x_p, fw, fb, hw, hb)


def init_q_mlp_params(key, ncha, size, ndim, taskcla):
    """Deterministic parameter init mirroring the module's layer shapes (f32,
    PyTorch (out_features, in_features) convention)."""
    d_in = ncha * size * size
    keys = jax.random.split(key, 2 + 2 * len(taskcla))
    scale_feat = 1.0 / jnp.sqrt(d_in)
    params = {
        "feat_w": jax.random.uniform(keys[0], (ndim, d_in), jnp.float32,
                                     -scale_feat, scale_feat),
        "feat_b": jax.random.uniform(keys[1], (ndim,), jnp.float32,
                                     -scale_feat, scale_feat),
        "heads": [],
    }
    scale_head = 1.0 / jnp.sqrt(ndim)
    for i, (_, n) in enumerate(taskcla):
        w = jax.random.uniform(keys[2 + 2 * i], (n, ndim), jnp.float32,
                               -scale_head, scale_head)
        b = jax.random.uniform(keys[3 + 2 * i], (n,), jnp.float32,
                               -scale_head, scale_head)
        params["heads"].append((w, b))
    return params


def pack_q_mlp_params(params, d_in, ndim, taskcla):
    """One-time packing: transpose, zero-pad, bf16-cast, and concatenate all task
    heads into a single lane-dense weight slab. Done at init, NOT per forward."""
    Dp = _round_up(d_in, 128)
    Hp = _round_up(ndim, 128)
    n_total = sum(n for _, n in taskcla)
    Np = _round_up(max(n_total, 1), 128)

    feat_w_t = jnp.zeros((Dp, Hp), jnp.bfloat16).at[:d_in, :ndim].set(
        params["feat_w"].T.astype(jnp.bfloat16))
    feat_b = jnp.zeros((1, Hp), jnp.float32).at[0, :ndim].set(params["feat_b"])

    head_w_t = jnp.zeros((Hp, Np), jnp.bfloat16)
    head_b = jnp.zeros((1, Np), jnp.float32)
    head_layout = []
    off = 0
    for (_, n), (w, b) in zip(taskcla, params["heads"]):
        head_w_t = head_w_t.at[:ndim, off:off + n].set(w.T.astype(jnp.bfloat16))
        head_b = head_b.at[0, off:off + n].set(b)
        head_layout.append((off, n))
        off += n

    packed = {"feat_w_t": feat_w_t, "feat_b": feat_b,
              "head_w_t": head_w_t, "head_b": head_b}
    return packed, tuple(head_layout)


def make_q_mlp_forward(packed, head_layout, d_in):
    """Returns forward(x) -> list of per-task logits, fused into one kernel call."""

    @jax.jit
    def fwd(x, fw, fb, hw, hb):
        B = x.shape[0]
        x_flat = x.reshape(B, -1)          # same flatten order as torch .view(B, -1)
        Bp = _round_up(B, 8)
        Dp = fw.shape[0]
        x_p = jnp.zeros((Bp, Dp), jnp.bfloat16).at[:B, :d_in].set(
            x_flat.astype(jnp.bfloat16))
        out = _fused_forward_call(x_p, fw, fb, hw, hb)
        return tuple(out[:B, off:off + n] for off, n in head_layout)

    def forward(x):
        return list(fwd(x, packed["feat_w_t"], packed["feat_b"],
                        packed["head_w_t"], packed["head_b"]))

    return forward


if __name__ == "__main__":
    # Small, module-consistent shapes: inputsize=(4, 16, 16), ndim=32,
    # taskcla = [(0, 10), (1, 5)], batch=2.
    ncha, size = 4, 16
    ndim = 32
    taskcla = [(0, 10), (1, 5)]
    batch = 2
    d_in = ncha * size * size

    key = jax.random.PRNGKey(0)
    k_param, k_x = jax.random.split(key)
    params = init_q_mlp_params(k_param, ncha, size, ndim, taskcla)
    packed, head_layout = pack_q_mlp_params(params, d_in, ndim, taskcla)
    forward = make_q_mlp_forward(packed, head_layout, d_in)

    x = jax.random.normal(k_x, (batch, ncha, size, size), jnp.float32)

    ys = forward(x)
    ys = [jax.block_until_ready(y) for y in ys]

    # Sanity: shapes + pure-JAX reference using the same bf16 operands / f32 accumulation.
    x_flat = x.reshape(batch, -1)
    xb = x_flat.astype(jnp.bfloat16)
    fwb = params["feat_w"].T.astype(jnp.bfloat16)
    h_ref = jnp.maximum(
        jnp.dot(xb, fwb, preferred_element_type=jnp.float32) + params["feat_b"], 0.0)
    h_ref_b = h_ref.astype(jnp.bfloat16)
    for (t, n), y, (w, b) in zip(taskcla, ys, params["heads"]):
        assert y.shape == (batch, n), (y.shape, (batch, n))
        y_ref = jnp.dot(h_ref_b, w.T.astype(jnp.bfloat16),
                        preferred_element_type=jnp.float32) + b
        assert jnp.allclose(y, y_ref, atol=1e-2, rtol=1e-2), (
            float(jnp.max(jnp.abs(y - y_ref))))

    print("KERNEL_OK")
</pallas_src>

<mosaic_0001>
module attributes {stable_mosaic.version = 11 : i64} {
  func.func @_q_mlp_fused_kernel(%arg0: i32, %arg1: memref<8x1024xbf16, #tpu.memory_space<vmem>>, %arg2: memref<1024x128xbf16, #tpu.memory_space<vmem>>, %arg3: memref<1x128xf32, #tpu.memory_space<vmem>>, %arg4: memref<128x128xbf16, #tpu.memory_space<vmem>>, %arg5: memref<1x128xf32, #tpu.memory_space<vmem>>, %arg6: memref<8x128xf32, #tpu.memory_space<vmem>>) attributes {dimension_semantics = [#tpu.dimension_semantics<arbitrary>], iteration_bounds = array<i64: 1>, scalar_prefetch = 0 : i64, scratch_operands = 0 : i64, tpu.core_type = #tpu.core_type<tc>, window_params = [{pipeline_mode = #tpu.pipeline_mode<synchronous>, transform_indices = @transform_0, window_bounds = array<i64: 8, 1024>}, {pipeline_mode = #tpu.pipeline_mode<synchronous>, transform_indices = @transform_1, window_bounds = array<i64: 1024, 128>}, {pipeline_mode = #tpu.pipeline_mode<synchronous>, transform_indices = @transform_2, window_bounds = array<i64: 1, 128>}, {pipeline_mode = #tpu.pipeline_mode<synchronous>, transform_indices = @transform_3, window_bounds = array<i64: 128, 128>}, {pipeline_mode = #tpu.pipeline_mode<synchronous>, transform_indices = @transform_4, window_bounds = array<i64: 1, 128>}, {pipeline_mode = #tpu.pipeline_mode<synchronous>, transform_indices = @transform_5, window_bounds = array<i64: 8, 128>}]} {
    %c0 = arith.constant 0 : index
    %c0_0 = arith.constant 0 : index
    %0 = vector.load %arg1[%c0, %c0_0] : memref<8x1024xbf16, #tpu.memory_space<vmem>>, vector<8x1024xbf16>
    %c0_1 = arith.constant 0 : index
    %c0_2 = arith.constant 0 : index
    %1 = vector.load %arg2[%c0_1, %c0_2] : memref<1024x128xbf16, #tpu.memory_space<vmem>>, vector<1024x128xbf16>
    %cst = arith.constant dense<0.000000e+00> : vector<8x128xf32>
    %2 = tpu.matmul %0, %1, %cst {dimension_numbers = #tpu.dot_dimension_numbers<[1], [0], [0], [1], [0, 0, 1, 1], [], []>} : vector<8x1024xbf16>, vector<1024x128xbf16>, vector<8x128xf32> -> vector<8x128xf32>
    %c0_3 = arith.constant 0 : index
    %c0_4 = arith.constant 0 : index
    %3 = vector.load %arg3[%c0_3, %c0_4] : memref<1x128xf32, #tpu.memory_space<vmem>>, vector<1x128xf32>
    %4 = vector.broadcast %3 : vector<1x128xf32> to vector<8x128xf32>
    %5 = arith.addf %2, %4 : vector<8x128xf32>
    %cst_5 = arith.constant 0.000000e+00 : f32
    %6 = vector.broadcast %cst_5 : f32 to vector<8x128xf32>
    %7 = arith.maximumf %5, %6 : vector<8x128xf32>
    %8 = arith.truncf %7 : vector<8x128xf32> to vector<8x128xbf16>
    %c0_6 = arith.constant 0 : index
    %c0_7 = arith.constant 0 : index
    %9 = vector.load %arg4[%c0_6, %c0_7] : memref<128x128xbf16, #tpu.memory_space<vmem>>, vector<128x128xbf16>
    %cst_8 = arith.constant dense<0.000000e+00> : vector<8x128xf32>
    %10 = tpu.matmul %8, %9, %cst_8 {dimension_numbers = #tpu.dot_dimension_numbers<[1], [0], [0], [1], [0, 0, 1, 1], [], []>} : vector<8x128xbf16>, vector<128x128xbf16>, vector<8x128xf32> -> vector<8x128xf32>
    %c0_9 = arith.constant 0 : index
    %c0_10 = arith.constant 0 : index
    %11 = vector.load %arg5[%c0_9, %c0_10] : memref<1x128xf32, #tpu.memory_space<vmem>>, vector<1x128xf32>
    %12 = vector.broadcast %11 : vector<1x128xf32> to vector<8x128xf32>
    %13 = arith.addf %10, %12 : vector<8x128xf32>
    %c0_11 = arith.constant 0 : index
    %c0_12 = arith.constant 0 : index
    %14 = vector.load %arg6[%c0_11, %c0_12] : memref<8x128xf32, #tpu.memory_space<vmem>>, vector<8x128xf32>
    tpu.vector_store %arg6[%c0_11, %c0_12], %13 {strides = array<i32>} : memref<8x128xf32, #tpu.memory_space<vmem>>, vector<8x128xf32>,
    return
  }
  func.func @transform_0(%arg0: i32) -> (i32, i32) {
    %c0_i32 = arith.constant 0 : i32
    %c0_i32_0 = arith.constant 0 : i32
    %c0_i32_1 = arith.constant 0 : i32
    return %c0_i32, %c0_i32_0 : i32, i32
  }
  func.func @transform_1(%arg0: i32) -> (i32, i32) {
    %c0_i32 = arith.constant 0 : i32
    %c0_i32_0 = arith.constant 0 : i32
    %c0_i32_1 = arith.constant 0 : i32
    return %c0_i32, %c0_i32_0 : i32, i32
  }
  func.func @transform_2(%arg0: i32) -> (i32, i32) {
    %c0_i32 = arith.constant 0 : i32
    %c0_i32_0 = arith.constant 0 : i32
    %c0_i32_1 = arith.constant 0 : i32
    return %c0_i32, %c0_i32_0 : i32, i32
  }
  func.func @transform_3(%arg0: i32) -> (i32, i32) {
    %c0_i32 = arith.constant 0 : i32
    %c0_i32_0 = arith.constant 0 : i32
    %c0_i32_1 = arith.constant 0 : i32
    return %c0_i32, %c0_i32_0 : i32, i32
  }
  func.func @transform_4(%arg0: i32) -> (i32, i32) {
    %c0_i32 = arith.constant 0 : i32
    %c0_i32_0 = arith.constant 0 : i32
    %c0_i32_1 = arith.constant 0 : i32
    return %c0_i32, %c0_i32_0 : i32, i32
  }
  func.func @transform_5(%arg0: i32) -> (i32, i32) {
    %c0_i32 = arith.constant 0 : i32
    %c0_i32_0 = arith.constant 0 : i32
    %c0_i32_1 = arith.constant 0 : i32
    return %c0_i32, %c0_i32_0 : i32, i32
  }
}

</mosaic_0001>

<bundles_post_ra>
// kernel: fwd.1
= control target key start
LH: loop header
LB: loop body
LE: loop exit
PB: predicated region body
PF: predicated region fallthrough
CT: control target
= control target key end

     0   :  { %10 = vsyncpa [#allocation3], 0  ;;  %s1173_s18 = smov [#allocation2]   ;;  %s1265_s0 = inlined_call_operand.vmem [shape: bf16[8,1024], index: 0, kind: input, shape index: {}]   ;;  %s1266_s1 = inlined_call_operand.hbm [shape: bf16[1024,128], index: 1, kind: input, shape index: {}]   ;;  %s1267_s2 = inlined_call_operand.vmem [shape: f32[1,128], index: 2, kind: input, shape index: {}]   ;;  %s1268_s3 = inlined_call_operand.vmem [shape: bf16[128,128], index: 3, kind: input, shape index: {}]   ;;  %s1269_s4 = inlined_call_operand.vmem [shape: f32[1,128], index: 4, kind: input, shape index: {}]   ;;  %s1270_s5 = inlined_call_operand.vmem [shape: f32[8,128], index: 5, kind: output, shape index: {}]  }
   0x1   :  { %s18_s19 = sshll.u32 %s1173_s18, 4  ;;  %s1149_s22 = scalar_lea.hbm %s1266_s1, 8192  ;;  %s19_s19 = int_to_ptr.vmem [resolvable:$true] %s18_s19 }
   0x2   :  { %p1150_p0 = scmp.ne.s32.totalorder %s1266_s1, %s1149_s22  ;;  %p1153_p1 = scmp.lt.u32.totalorder %s1149_s22, %s1266_s1 }
   0x4   :  { %p1155_p2 = pnand %p1153_p1, %p1150_p0 }
   0x6   :  { %1158 = shalt.err (!%p1155_p2)
}
   0x7   :  { %s1159_s27 = scalar_lea.vmem %s19_s19, 8192  ;;  %p1164_p4 = scmp.lt.s32.totalorder %s19_s19, %s19_s19 }
   0x8   :  { %p1160_p3 = scmp.ne.s32.totalorder %s19_s19, %s1159_s27  ;;  %p1165_p5 = scmp.lt.s32.totalorder %s1159_s27, %s1159_s27 }
   0xa   :  { %p1166_p6 = por %p1165_p5, %p1164_p4 }
   0xc   :  { %p1167_p7 = pnand %p1166_p6, %p1160_p3 }
   0xe   :  { %1170 = shalt.err (!%p1167_p7)
}
   0xf   :  { %s1174_s28 = smov 64   ;;  %s1175_s29 = smov 4  }
  0x10   :  { %24 = dma.hbm_to_vmem [thread:$0]  %s1266_s1, 8192, %s19_s19, [#allocation3], %s1174_s28, %s1174_s28, %s1175_s29  }
  0x11   :  { %1171 = dma.done.wait [#allocation3], 8192  }
  0x12   :  { %1172 = vsyncadd [#allocation3], 4294959104  ;;  %v1069_v0 = vld [vmem:[#allocation2 + $0x40] sm:$0xff]   ;;  %v1073_v4 = vld [vmem:[#allocation2 + $0x48] sm:$0xff]   ;;  %vm1177_vm0 = vmmov 0  }
  0x13   :  { %v1070_v1 = vld [vmem:[#allocation2 + $0xc0] sm:$0xff]   ;;  %947 = vmatprep.subr.bf16.mxu0 %v1069_v0  ;;  %v1074_v5 = vld [vmem:[#allocation2 + $0xc8] sm:$0xff]   ;;  %v1077_v8 = vld [vmem:[#allocation2 + $0x50] sm:$0xff]  }
  0x14   :  { %v1071_v2 = vld [vmem:[#allocation2] sm:$0xff]   ;;  %969 = vmatprep.subr.bf16.mxu1 %v1070_v1  ;;  %v1075_v6 = vld [vmem:[#allocation2 + $0x8] sm:$0xff]   ;;  %v1078_v9 = vld [vmem:[#allocation2 + $0xd0] sm:$0xff]  }
  0x15   :  { %v1072_v3 = vld [vmem:[#allocation2 + $0x80] sm:$0xff]   ;;  %948 = vmatpush3.bf16.msra.mxu0 %v1071_v2  ;;  %v1076_v7 = vld [vmem:[#allocation2 + $0x88] sm:$0xff]   ;;  %v1079_v10 = vld [vmem:[#allocation2 + $0x10] sm:$0xff]  }
  0x16   :  { %970 = vmatpush3.bf16.msra.mxu1 %v1072_v3  ;;  %949 = vmatprep.subr.bf16.mxu0 %v1073_v4  ;;  %v1080_v11 = vld [vmem:[#allocation2 + $0x90] sm:$0xff]   ;;  %v1081_v12 = vld [vmem:[#allocation2 + $0x58] sm:$0xff]   ;;  %v1085_v16 = vld [vmem:[#allocation2 + $0x60] sm:$0xff]  }
  0x17   :  { %971 = vmatprep.subr.bf16.mxu1 %v1074_v5  ;;  %v1082_v13 = vld [vmem:[#allocation2 + $0xd8] sm:$0xff]   ;;  %v1086_v17 = vld [vmem:[#allocation2 + $0xe0] sm:$0xff]   ;;  %v1089_v20 = vld [vmem:[#allocation2 + $0x68] sm:$0xff]  }
  0x18   :  { %v1083_v14 = vld [vmem:[#allocation2 + $0x18] sm:$0xff]   ;;  %v1087_v18 = vld [vmem:[#allocation2 + $0x20] sm:$0xff]   ;;  %v1090_v21 = vld [vmem:[#allocation2 + $0xe8] sm:$0xff]  }
  0x19   :  { %950 = vmatpush3.bf16.msra.mxu0 %v1075_v6  ;;  %v1084_v15 = vld [vmem:[#allocation2 + $0x98] sm:$0xff]   ;;  %v1088_v19 = vld [vmem:[#allocation2 + $0xa0] sm:$0xff]   ;;  %v1091_v22 = vld [vmem:[#allocation2 + $0x28] sm:$0xff]  }
  0x1a   :  { %972 = vmatpush3.bf16.msra.mxu1 %v1076_v7  ;;  %951 = vmatprep.subr.bf16.mxu0 %v1077_v8  ;;  %v1092_v23 = vld [vmem:[#allocation2 + $0xa8] sm:$0xff]   ;;  %v1093_v24 = vld [vmem:[#allocation2 + $0x70] sm:$0xff]   ;;  %v1097_v28 = vld [vmem:[#allocation2 + $0x78] sm:$0xff]  }
  0x1b   :  { %973 = vmatprep.subr.bf16.mxu1 %v1078_v9  ;;  %v1094_v25 = vld [vmem:[#allocation2 + $0xf0] sm:$0xff]   ;;  %v1098_v29 = vld [vmem:[#allocation2 + $0xf8] sm:$0xff]   ;;  %v35_v32 = vld [vmem:[%s1265_s0] sm:$0xff] }
  0x1c   :  { %v1095_v26 = vld [vmem:[#allocation2 + $0x30] sm:$0xff]   ;;  %v1099_v30 = vld [vmem:[#allocation2 + $0x38] sm:$0xff]   ;;  %v36_v33 = vld [vmem:[%s1265_s0 + $0x8] sm:$0xff]  ;;  %v866_v34 = vcombine.low %v35_v32, %v35_v32  ;;  %v867_v35 = vcombine.high %v35_v32, %v35_v32 }
  0x1d   :  { %952 = vmatpush3.bf16.msra.mxu0 %v1079_v10  ;;  %v1096_v27 = vld [vmem:[#allocation2 + $0xb0] sm:$0xff]   ;;  %v1100_v31 = vld [vmem:[#allocation2 + $0xb8] sm:$0xff]   ;;  %v868_v36 = vcombine.low %v36_v33, %v36_v33  ;;  %v869_v37 = vcombine.high %v36_v33, %v36_v33  ;;  %v1105_v38 = vld [vmem:[#allocation2 + $0x140] sm:$0xff]  }
  0x1e   :  { %974 = vmatpush3.bf16.msra.mxu1 %v1080_v11  ;;  %953 = vmatprep.subr.bf16.mxu0 %v1081_v12  ;;  %v1106_v39 = vld [vmem:[#allocation2 + $0x1c0] sm:$0xff]   ;;  %v1109_v42 = vld [vmem:[#allocation2 + $0x148] sm:$0xff]   ;;  %v1113_v46 = vld [vmem:[#allocation2 + $0x150] sm:$0xff]  }
  0x1f   :  { %975 = vmatprep.subr.bf16.mxu1 %v1082_v13  ;;  %618 = vmatprep.mubr.bf16.mxu0 %v867_v35  ;;  %v1107_v40 = vld [vmem:[#allocation2 + $0x100] sm:$0xff]   ;;  %v1110_v43 = vld [vmem:[#allocation2 + $0x1c8] sm:$0xff]   ;;  %v1114_v47 = vld [vmem:[#allocation2 + $0x1d0] sm:$0xff]   ;;  %v1176_v13 = vmov 0.0  }
  0x20   :  { %658 = vmatprep.mubr.bf16.mxu1 %v869_v37  ;;  %v1108_v41 = vld [vmem:[#allocation2 + $0x180] sm:$0xff]   ;;  %v1111_v44 = vld [vmem:[#allocation2 + $0x108] sm:$0xff]   ;;  %v1115_v48 = vld [vmem:[#allocation2 + $0x110] sm:$0xff]  }
  0x21   :  { %954 = vmatpush3.bf16.msra.mxu0 %v1083_v14  ;;  %v1112_v45 = vld [vmem:[#allocation2 + $0x188] sm:$0xff]   ;;  %v1116_v49 = vld [vmem:[#allocation2 + $0x190] sm:$0xff]   ;;  %v1117_v50 = vld [vmem:[#allocation2 + $0x158] sm:$0xff]  }
  0x22   :  { %976 = vmatpush3.bf16.msra.mxu1 %v1084_v15  ;;  %955 = vmatprep.subr.bf16.mxu0 %v1085_v16  ;;  %v1118_v51 = vld [vmem:[#allocation2 + $0x1d8] sm:$0xff]   ;;  %v1121_v54 = vld [vmem:[#allocation2 + $0x160] sm:$0xff]   ;;  %v1125_v58 = vld [vmem:[#allocation2 + $0x168] sm:$0xff]  }
  0x23   :  { %977 = vmatprep.subr.bf16.mxu1 %v1086_v17  ;;  %v1119_v52 = vld [vmem:[#allocation2 + $0x118] sm:$0xff]   ;;  %v1122_v55 = vld [vmem:[#allocation2 + $0x1e0] sm:$0xff]   ;;  %v1126_v59 = vld [vmem:[#allocation2 + $0x1e8] sm:$0xff]  }
  0x24   :  { %v1120_v53 = vld [vmem:[#allocation2 + $0x198] sm:$0xff]   ;;  %v1123_v56 = vld [vmem:[#allocation2 + $0x120] sm:$0xff]   ;;  %v1127_v60 = vld [vmem:[#allocation2 + $0x128] sm:$0xff]  }
  0x25   :  { %956 = vmatpush3.bf16.msra.mxu0 %v1087_v18  ;;  %v1124_v57 = vld [vmem:[#allocation2 + $0x1a0] sm:$0xff]   ;;  %v1128_v61 = vld [vmem:[#allocation2 + $0x1a8] sm:$0xff]   ;;  %v1129_v62 = vld [vmem:[#allocation2 + $0x170] sm:$0xff]  }
  0x26   :  { %978 = vmatpush3.bf16.msra.mxu1 %v1088_v19  ;;  %957 = vmatprep.subr.bf16.mxu0 %v1089_v20  ;;  %v1130_v63 = vld [vmem:[#allocation2 + $0x1f0] sm:$0xff]   ;;  %v1133_v2 = vld [vmem:[#allocation2 + $0x178] sm:$0xff]   ;;  %v1141_v12 = vld [vmem:[%s1268_s3] sm:$0xff]  }
  0x27   :  { %979 = vmatprep.subr.bf16.mxu1 %v1090_v21  ;;  %v1131_v0 = vld [vmem:[#allocation2 + $0x130] sm:$0xff]   ;;  %v1134_v3 = vld [vmem:[#allocation2 + $0x1f8] sm:$0xff]   ;;  %v1142_v14 = vld [vmem:[%s1268_s3 + $0x8] sm:$0xff]  }
  0x28   :  { %v1132_v1 = vld [vmem:[#allocation2 + $0x1b0] sm:$0xff]   ;;  %v1135_v4 = vld [vmem:[#allocation2 + $0x138] sm:$0xff]   ;;  %v1145_v17 = vld [vmem:[%s1268_s3 + $0x20] sm:$0xff]  }
  0x29   :  { %958 = vmatpush3.bf16.msra.mxu0 %v1091_v22  ;;  %v1136_v5 = vld [vmem:[#allocation2 + $0x1b8] sm:$0xff]   ;;  %v37_v6 = vld [vmem:[%s1265_s0 + $0x10] sm:$0xff]  ;;  %v1146_v18 = vld [vmem:[%s1268_s3 + $0x28] sm:$0xff]  }
  0x2a   :  { %980 = vmatpush3.bf16.msra.mxu1 %v1092_v23  ;;  %959 = vmatprep.subr.bf16.mxu0 %v1093_v24  ;;  %v870_v7 = vcombine.low %v37_v6, %v37_v6  ;;  %v871_v8 = vcombine.high %v37_v6, %v37_v6  ;;  %v38_v9 = vld [vmem:[%s1265_s0 + $0x18] sm:$0xff]  ;;  %v1143_v15 = vld [vmem:[%s1268_s3 + $0x10] sm:$0xff]   ;;  %v865_v23 = vld [vmem:[%s1267_s2] ss:$0 sm:$0xff] }
  0x2b   :  { %981 = vmatprep.subr.bf16.mxu1 %v1094_v25  ;;  %v872_v10 = vcombine.low %v38_v9, %v38_v9  ;;  %v873_v11 = vcombine.high %v38_v9, %v38_v9  ;;  %v1144_v16 = vld [vmem:[%s1268_s3 + $0x18] sm:$0xff]   ;;  %v1147_v19 = vld [vmem:[%s1268_s3 + $0x30] sm:$0xff]  }
  0x2c   :  { %v1148_v20 = vld [vmem:[%s1268_s3 + $0x38] sm:$0xff]  }
  0x2d   :  { %960 = vmatpush3.bf16.msra.mxu0 %v1095_v26 }
  0x2e   :  { %982 = vmatpush3.bf16.msra.mxu1 %v1096_v27  ;;  %961 = vmatprep.subr.bf16.mxu0 %v1097_v28 }
  0x2f   :  { %983 = vmatprep.subr.bf16.mxu1 %v1098_v29 }
  0x31   :  { %962 = vmatpush3.bf16.msra.mxu0 %v1099_v30 }
  0x32   :  { %984 = vmatpush3.bf16.msra.mxu1 %v1100_v31  ;;  %991 = vmatprep.subr.bf16.mxu0 %v1105_v38 }
  0x33   :  { %1013 = vmatprep.subr.bf16.mxu1 %v1106_v39 }
  0x34   :  { %619 = vmatmul.mubr.bf16.vlgmr.msra.gmra.mrb[0].mxu0 %v866_v34 }
  0x35   :  { %659 = vmatmul.mubr.bf16.vlgmr.msra.gmra.mrb[0].mxu1 %v868_v36  ;;  %992 = vmatpush3.bf16.msra.mxu0 %v1107_v40 }
  0x36   :  { %1014 = vmatpush3.bf16.msra.mxu1 %v1108_v41  ;;  %993 = vmatprep.subr.bf16.mxu0 %v1109_v42 }
  0x37   :  { %1015 = vmatprep.subr.bf16.mxu1 %v1110_v43  ;;  %698 = vmatprep.mubr.bf16.mxu0 %v871_v8 }
  0x38   :  { %738 = vmatprep.mubr.bf16.mxu1 %v873_v11 }
  0x39   :  { %994 = vmatpush3.bf16.msra.mxu0 %v1111_v44 }
  0x3a   :  { %1016 = vmatpush3.bf16.msra.mxu1 %v1112_v45  ;;  %995 = vmatprep.subr.bf16.mxu0 %v1113_v46 }
  0x3b   :  { %1017 = vmatprep.subr.bf16.mxu1 %v1114_v47 }
  0x3d   :  { %996 = vmatpush3.bf16.msra.mxu0 %v1115_v48  ;;  %v938_v48 = vld [vmem:[%s1269_s4] ss:$0 sm:$0xff] }
  0x3e   :  { %1018 = vmatpush3.bf16.msra.mxu1 %v1116_v49  ;;  %997 = vmatprep.subr.bf16.mxu0 %v1117_v50 }
  0x3f   :  { %1019 = vmatprep.subr.bf16.mxu1 %v1118_v51 }
  0x41   :  { %998 = vmatpush3.bf16.msra.mxu0 %v1119_v52 }
  0x42   :  { %1020 = vmatpush3.bf16.msra.mxu1 %v1120_v53  ;;  %999 = vmatprep.subr.bf16.mxu0 %v1121_v54 }
  0x43   :  { %1021 = vmatprep.subr.bf16.mxu1 %v1122_v55 }
  0x45   :  { %1000 = vmatpush3.bf16.msra.mxu0 %v1123_v56 }
  0x46   :  { %1022 = vmatpush3.bf16.msra.mxu1 %v1124_v57  ;;  %1001 = vmatprep.subr.bf16.mxu0 %v1125_v58 }
  0x47   :  { %1023 = vmatprep.subr.bf16.mxu1 %v1126_v59 }
  0x49   :  { %1002 = vmatpush3.bf16.msra.mxu0 %v1127_v60 }
  0x4a   :  { %1024 = vmatpush3.bf16.msra.mxu1 %v1128_v61  ;;  %1003 = vmatprep.subr.bf16.mxu0 %v1129_v62 }
  0x4b   :  { %1025 = vmatprep.subr.bf16.mxu1 %v1130_v63 }
  0x4d   :  { %1004 = vmatpush3.bf16.msra.mxu0 %v1131_v0 }
  0x4e   :  { %1026 = vmatpush3.bf16.msra.mxu1 %v1132_v1  ;;  %1005 = vmatprep.subr.bf16.mxu0 %v1133_v2 }
  0x4f   :  { %1027 = vmatprep.subr.bf16.mxu1 %v1134_v3 }
  0x51   :  { %1006 = vmatpush3.bf16.msra.mxu0 %v1135_v4 }
  0x52   :  { %1028 = vmatpush3.bf16.msra.mxu1 %v1136_v5  ;;  %1044 = vmatprep.subr.bf16.mxu0 %v1176_v13 }
  0x54   :  { %699 = vmatmul.mubr.bf16.vlgmr.msra.gmra.mrb[4].mxu0 %v870_v7 }
  0x55   :  { %739 = vmatmul.mubr.bf16.vlgmr.msra.gmra.mrb[4].mxu1 %v872_v10  ;;  %1045 = vmatpush3.bf16.msra.mxu0 %v1141_v12 }
  0x56   :  { %1046 = vmatprep.subr.bf16.mxu0 %v1176_v13  ;;  %1060 = vmatprep.mubr.msk.bf16.mxu0 %vm1177_vm0, %v1176_v13 }
  0x59   :  { %1047 = vmatpush3.bf16.msra.mxu0 %v1142_v14 }
  0x5a   :  { %1048 = vmatprep.subr.bf16.mxu0 %v1176_v13 }
  0x5d   :  { %1049 = vmatpush3.bf16.msra.mxu0 %v1143_v15 }
  0x5e   :  { %1050 = vmatprep.subr.bf16.mxu0 %v1176_v13 }
  0x61   :  { %1051 = vmatpush3.bf16.msra.mxu0 %v1144_v16 }
  0x62   :  { %1052 = vmatprep.subr.bf16.mxu0 %v1176_v13 }
  0x65   :  { %1053 = vmatpush3.bf16.msra.mxu0 %v1145_v17 }
  0x66   :  { %1054 = vmatprep.subr.bf16.mxu0 %v1176_v13 }
  0x69   :  { %1055 = vmatpush3.bf16.msra.mxu0 %v1146_v18 }
  0x6a   :  { %1056 = vmatprep.subr.bf16.mxu0 %v1176_v13 }
  0x6d   :  { %1057 = vmatpush3.bf16.msra.mxu0 %v1147_v19 }
  0x6e   :  { %1058 = vmatprep.subr.bf16.mxu0 %v1176_v13 }
  0x71   :  { %1059 = vmatpush3.bf16.msra.mxu0 %v1148_v20 }
 0x107   :  { %v963_v21 = vpop.f32.mrb[0].mxu0 }
 0x108   :  { %v985_v22 = vpop.f32.mrb[0].mxu1  ;;  %v964_v24 = vpop.f32.mrb[1].mxu0 }
 0x109   :  { %v986_v25 = vpop.f32.mrb[1].mxu1  ;;  %v965_v26 = vadd.f32 %v964_v24, %v963_v21  ;;  %v966_v28 = vpop.f32.mrb[2].mxu0 }
 0x10a   :  { %v987_v27 = vadd.f32 %v986_v25, %v985_v22  ;;  %v988_v29 = vpop.f32.mrb[2].mxu1  ;;  %v967_v30 = vpop.f32.mrb[3].mxu0 }
 0x10b   :  { %v989_v31 = vpop.f32.mrb[3].mxu1  ;;  %v621_v32 = vadd.f32 %v965_v26, %v865_v23 }
 0x10d   :  { %v661_v33 = vadd.f32 %v987_v27, %v621_v32 }
 0x127   :  { %v1007_v34 = vpop.f32.mrb[4].mxu0 }
 0x128   :  { %v1029_v35 = vpop.f32.mrb[4].mxu1  ;;  %v1008_v36 = vpop.f32.mrb[5].mxu0 }
 0x129   :  { %v1030_v37 = vpop.f32.mrb[5].mxu1  ;;  %v1009_v38 = vadd.f32 %v1008_v36, %v1007_v34  ;;  %v1010_v40 = vpop.f32.mrb[6].mxu0 }
 0x12a   :  { %v1031_v39 = vadd.f32 %v1030_v37, %v1029_v35  ;;  %v1032_v41 = vpop.f32.mrb[6].mxu1  ;;  %v1011_v42 = vpop.f32.mrb[7].mxu0 }
 0x12b   :  { %v1033_v43 = vpop.f32.mrb[7].mxu1  ;;  %v701_v44 = vadd.f32 %v1009_v38, %v661_v33 }
 0x12d   :  { %v741_v45 = vadd.f32 %v1031_v39, %v701_v44 }
 0x12f   :  { %v746_v46 = vmax.f32 %v741_v45, 0.0 }
 0x131   :  { %v747_v47 = vpack.c.bf16 %v746_v46, %v746_v46 }
 0x133   :  { %1061 = vmatmul.mubr.bf16.vlgmr.msra.gmra.mrb[8].mxu0 %v747_v47 }
 0x206   :  { %v853_v49 = vpop.f32.mrb[8].mxu0 }
 0x207   :  { %v854_v50 = vadd.f32 %v938_v48, %v853_v49  ;;  %v1062_v51 = vpop.f32.mrb[9].mxu0 }
 0x208   :  { %v856_v52 = vpop.f32.mrb[10].mxu0 }
 0x209   :  { %859 = vst [vmem:[%s1270_s5] sm:$0xff] %v854_v50  ;;  %v1063_v53 = vpop.f32.mrb[11].mxu0 }
 0x20a   :  { %864 = vsyncpa [#allocation3], 1 }

</bundles_post_ra>
